<compile_context>
chip_gen: v6e
topology: v6e:2x2x1
jax: 0.10.0
libtpu: 0.0.40
codegen_flags: <defaults>
</compile_context>

<pallas_src>
import jax
import jax.numpy as jnp
from jax.experimental import pallas as pl
from jax.experimental.pallas import tpu as pltpu


def _round_up(x, m):
    return ((x + m - 1) // m) * m


def _make_fused_kernel(layer_dims):
    """layer_dims: tuple of (K, Cout, Cin) per layer (static Python ints)."""
    n_layers = len(layer_dims)

    def kernel(*refs):
        x_ref = refs[0]
        out_ref = refs[1 + 2 * n_layers]

        act = x_ref[...]                                   # (Cin0, M) bf16, M = B_BLK*L_pad
        for l, (k_sz, cout, cin) in enumerate(layer_dims):
            w_ref = refs[1 + 2 * l]                        # (Cout, K*Cin) bf16
            v_ref = refs[2 + 2 * l]                        # (Cout, 1) or (Cout, 3) f32
            is_last = l == n_layers - 1

            # In-kernel im2col: stacked RHS (K*Cin, M); row k*Cin + c = act[c] shifted
            # left by k lanes (zero tail).  Shifts only ever read within each sample's
            # L_pad stride, so sample boundaries never leak into valid outputs.
            rows = [act]
            for k in range(1, k_sz):
                rows.append(jnp.concatenate(
                    [act[:, k:], jnp.zeros((cin, k), act.dtype)], axis=1))
            rhs = jnp.concatenate(rows, axis=0) if k_sz > 1 else act

            # Single MXU matmul per layer (bf16 operands, f32 accumulation).
            acc = jnp.dot(w_ref[...], rhs, preferred_element_type=jnp.float32)

            acc = acc + v_ref[:, 0:1]                      # (folded) conv bias
            acc = jnp.maximum(acc, 0.0)                    # ReLU
            if is_last:
                # Last layer's BatchNorm1d (eval) affine; hidden-layer affines were
                # folded into the next conv's weights/bias host-side.
                acc = acc * v_ref[:, 1:2] + v_ref[:, 2:3]
                act = acc                                  # keep f32 for the store
            else:
                act = acc.astype(jnp.bfloat16)             # bf16 operand for next matmul
            # Dropout: identity in inference mode.

        out_ref[...] = act.astype(out_ref.dtype)

    return kernel


def fcn_encoder_forward(x, params, *, eps=1e-5, block_batch=8):
    """Inference forward of FCN_Encoder_Module.  x: (N, C_in, L) float32 (PyTorch NCL)."""
    n, c_in, length = x.shape
    n_layers = len(params)

    # ---------- host-side parameter prep ----------
    w_raw = [p["weight"].astype(jnp.float32) for p in params]        # (Cout, Cin, K)
    b_raw = [p["bias"].astype(jnp.float32) for p in params]
    scale = [(p["gamma"] / jnp.sqrt(p["running_var"] + eps)).astype(jnp.float32)
             for p in params]
    shift = [(p["beta"] - p["running_mean"] * s).astype(jnp.float32)
             for p, s in zip(params, scale)]

    # Fold layer l's post-ReLU BN affine into layer l+1's conv (exact for any sign):
    #   W'_{l+1} = W_{l+1} * scale_l[cin]
    #   b'_{l+1} = b_{l+1} + sum_{cin,k} W_{l+1}[o,cin,k] * shift_l[cin]
    w_fold, b_fold = [w_raw[0]], [b_raw[0]]
    for l in range(1, n_layers):
        w_fold.append(w_raw[l] * scale[l - 1][None, :, None])
        b_fold.append(b_raw[l] + jnp.einsum("ock,c->o", w_raw[l], shift[l - 1]))

    # ---------- shapes / padding ----------
    b_blk = max(1, min(block_batch, n))
    n_pad = _round_up(n, b_blk)
    l_pad = _round_up(length, 128)              # lane-dense per-sample stride
    m_blk = b_blk * l_pad                       # matmul lane width per grid step

    l_final = length - sum(int(p["weight"].shape[-1]) - 1 for p in params)
    assert l_final >= 1, "sequence too short for the given kernel sizes"

    # (N, C, L) f32 -> (C, N_pad * L_pad) bf16, each sample at a fixed L_pad stride.
    x_p = jnp.pad(x.astype(jnp.float32),
                  ((0, n_pad - n), (0, 0), (0, l_pad - length)))
    x_flat = jnp.transpose(x_p, (1, 0, 2)).reshape(c_in, n_pad * l_pad)
    x_flat = x_flat.astype(jnp.bfloat16)

    flat_inputs = [x_flat]
    in_specs = [pl.BlockSpec((c_in, m_blk), lambda i: (0, i))]

    layer_dims = []
    flops = 0
    bytes_accessed = x_flat.size * 2                        # bf16 input read

    cin, l_cur = c_in, length
    for l in range(n_layers):
        cout, _, k_sz = (int(d) for d in w_raw[l].shape)
        l_out = l_cur - k_sz + 1

        # (Cout, Cin, K) -> (Cout, K*Cin), matching the in-kernel RHS row order (k, cin).
        w_mat = jnp.transpose(w_fold[l], (0, 2, 1)).reshape(cout, k_sz * cin)
        w_mat = w_mat.astype(jnp.bfloat16)

        if l == n_layers - 1:
            vec = jnp.stack([b_fold[l], scale[l], shift[l]], axis=1)      # (Cout, 3)
        else:
            vec = b_fold[l].reshape(cout, 1)                              # (Cout, 1)
        vec = vec.astype(jnp.float32)

        flat_inputs += [w_mat, vec]
        # Constant index maps keep the (tiny) params VMEM-resident across grid steps.
        in_specs += [
            pl.BlockSpec((cout, k_sz * cin), lambda i: (0, 0)),
            pl.BlockSpec((cout, int(vec.shape[1])), lambda i: (0, 0)),
        ]

        layer_dims.append((k_sz, cout, cin))
        flops += 2 * n * cout * cin * k_sz * l_out
        bytes_accessed += cout * k_sz * cin * 2 + cout * int(vec.shape[1]) * 4
        cin, l_cur = cout, l_out

    c_last = cin
    bytes_accessed += c_last * n_pad * l_pad * 4            # f32 output write

    out_shape = jax.ShapeDtypeStruct((c_last, n_pad * l_pad), jnp.float32)
    out_spec = pl.BlockSpec((c_last, m_blk), lambda i: (0, i))

    # VMEM: double-buffered input+output blocks + margin for params and the in-kernel
    # RHS/acc working set; clamped well under v7x's 64 MiB physical VMEM.
    io_bytes = c_in * m_blk * 2 + c_last * m_blk * 4
    vmem_limit = int(max(16 * 1024 * 1024,
                         min(4 * io_bytes + (4 << 20), 48 * 1024 * 1024)))

    out_flat = pl.pallas_call(
        _make_fused_kernel(tuple(layer_dims)),
        out_shape=out_shape,
        grid=(n_pad // b_blk,),                             # batch-block grid
        in_specs=in_specs,
        out_specs=out_spec,
        compiler_params=pltpu.CompilerParams(
            dimension_semantics=("parallel",),              # megacore sharding on v7x
            vmem_limit_bytes=vmem_limit,
        ),
        cost_estimate=pl.CostEstimate(
            flops=int(flops), transcendentals=0, bytes_accessed=int(bytes_accessed)),
    )(*flat_inputs)

    # Strip per-sample padding / garbage columns and restore PyTorch NCL layout.
    out = out_flat.reshape(c_last, n_pad, l_pad)[:, :n, :l_final]
    return jnp.transpose(out, (1, 0, 2))


def _reference_forward(x, params, *, eps=1e-5):
    """Pure-JAX f32 reference (matches PyTorch eval-mode forward)."""
    out = x.astype(jnp.float32)
    for p in params:
        w = p["weight"].astype(jnp.float32)                 # (Cout, Cin, K)
        cout, _, k_sz = w.shape
        l_out = out.shape[-1] - k_sz + 1
        y = jnp.zeros((out.shape[0], cout, l_out), jnp.float32)
        for k in range(k_sz):
            y = y + jnp.einsum("oc,ncl->nol", w[:, :, k], out[:, :, k:k + l_out])
        y = y + p["bias"][None, :, None]
        y = jnp.maximum(y, 0.0)
        scale = p["gamma"] / jnp.sqrt(p["running_var"] + eps)
        shift = p["beta"] - p["running_mean"] * scale
        out = y * scale[None, :, None] + shift[None, :, None]
    return out


def init_fcn_encoder_params(key, n_in, channels, kernel_sizes):
    """Deterministic synthetic parameters, shapes identical to the PyTorch module."""
    input_dims = [n_in] + list(channels[:-1])
    params = []
    for cin, cout, k in zip(input_dims, channels, kernel_sizes):
        key, kw, kb, kg, kbe, km, kv = jax.random.split(key, 7)
        bound = 1.0 / jnp.sqrt(cin * k)
        params.append(dict(
            weight=jax.random.uniform(kw, (cout, cin, k), jnp.float32, -bound, bound),
            bias=jax.random.uniform(kb, (cout,), jnp.float32, -bound, bound),
            gamma=1.0 + 0.1 * jax.random.normal(kg, (cout,), jnp.float32),
            beta=0.1 * jax.random.normal(kbe, (cout,), jnp.float32),
            running_mean=0.05 * jax.random.normal(km, (cout,), jnp.float32),
            running_var=jnp.abs(1.0 + 0.1 * jax.random.normal(kv, (cout,), jnp.float32)),
        ))
    return params


if __name__ == "__main__":
    # FCN_Encoder_Module(n_in=4, channels=[8, 16], kernel_sizes=[3, 3], dropout=0.1), eval mode.
    n_in = 4
    channels = [8, 16]
    kernel_sizes = [3, 3]

    key = jax.random.PRNGKey(0)
    key, kx, kp = jax.random.split(key, 3)

    # L deliberately NOT hand-picked to land on 128: the kernel pads each sample to a
    # 128-multiple stride internally.  N=16 with B_BLK=8 -> 2 "parallel" grid steps.
    N, L = 16, 150
    x = jax.random.normal(kx, (N, n_in, L), jnp.float32)      # NCL, like PyTorch Conv1d input
    params = init_fcn_encoder_params(kp, n_in, channels, kernel_sizes)

    out = jax.jit(fcn_encoder_forward)(x, params)
    out = jax.block_until_ready(out)

    expected_len = L - sum(k - 1 for k in kernel_sizes)
    assert out.shape == (N, channels[-1], expected_len), out.shape
    assert bool(jnp.all(jnp.isfinite(out)))

    ref = _reference_forward(x, params)
    max_err = float(jnp.max(jnp.abs(out - ref)))
    rms_err = float(jnp.sqrt(jnp.mean((out - ref) ** 2)))
    # bf16 matmul-operand (and bf16 input) tolerance.
    assert max_err < 1e-1 and rms_err < 1e-2, (max_err, rms_err)

    print("KERNEL_OK")
</pallas_src>

<mosaic_0001>
module attributes {stable_mosaic.version = 11 : i64} {
  func.func @kernel(%arg0: i32, %arg1: memref<4x2048xbf16, #tpu.memory_space<vmem>>, %arg2: memref<8x12xbf16, #tpu.memory_space<vmem>>, %arg3: memref<8x1xf32, #tpu.memory_space<vmem>>, %arg4: memref<16x24xbf16, #tpu.memory_space<vmem>>, %arg5: memref<16x3xf32, #tpu.memory_space<vmem>>, %arg6: memref<16x2048xf32, #tpu.memory_space<vmem>>) attributes {dimension_semantics = [#tpu.dimension_semantics<parallel>], iteration_bounds = array<i64: 2>, scalar_prefetch = 0 : i64, scratch_operands = 0 : i64, tpu.core_type = #tpu.core_type<tc>, window_params = [{transform_indices = @transform_0, window_bounds = array<i64: 4, 2048>}, {pipeline_mode = #tpu.pipeline_mode<synchronous>, transform_indices = @transform_1, window_bounds = array<i64: 8, 12>}, {pipeline_mode = #tpu.pipeline_mode<synchronous>, transform_indices = @transform_2, window_bounds = array<i64: 8, 1>}, {pipeline_mode = #tpu.pipeline_mode<synchronous>, transform_indices = @transform_3, window_bounds = array<i64: 16, 24>}, {pipeline_mode = #tpu.pipeline_mode<synchronous>, transform_indices = @transform_4, window_bounds = array<i64: 16, 3>}, {transform_indices = @transform_5, window_bounds = array<i64: 16, 2048>}]} {
    %c0 = arith.constant 0 : index
    %c0_0 = arith.constant 0 : index
    %0 = vector.load %arg1[%c0, %c0_0] : memref<4x2048xbf16, #tpu.memory_space<vmem>>, vector<4x2048xbf16>
    %1 = vector.extract_strided_slice %0 {offsets = [0, 1], sizes = [4, 2047], strides = [1, 1]} : vector<4x2048xbf16> to vector<4x2047xbf16>
    %cst = arith.constant 0.000000e+00 : bf16
    %2 = vector.broadcast %cst : bf16 to vector<4x1xbf16>
    %3 = tpu.concatenate %1, %2 in 1 : vector<4x2047xbf16>, vector<4x1xbf16> -> vector<4x2048xbf16>
    %4 = vector.extract_strided_slice %0 {offsets = [0, 2], sizes = [4, 2046], strides = [1, 1]} : vector<4x2048xbf16> to vector<4x2046xbf16>
    %cst_1 = arith.constant 0.000000e+00 : bf16
    %5 = vector.broadcast %cst_1 : bf16 to vector<4x2xbf16>
    %6 = tpu.concatenate %4, %5 in 1 : vector<4x2046xbf16>, vector<4x2xbf16> -> vector<4x2048xbf16>
    %7 = tpu.concatenate %0, %3, %6 in 0 : vector<4x2048xbf16>, vector<4x2048xbf16>, vector<4x2048xbf16> -> vector<12x2048xbf16>
    %c0_2 = arith.constant 0 : index
    %c0_3 = arith.constant 0 : index
    %8 = vector.load %arg2[%c0_2, %c0_3] : memref<8x12xbf16, #tpu.memory_space<vmem>>, vector<8x12xbf16>
    %cst_4 = arith.constant dense<0.000000e+00> : vector<8x2048xf32>
    %9 = tpu.matmul %8, %7, %cst_4 {dimension_numbers = #tpu.dot_dimension_numbers<[1], [0], [0], [1], [0, 0, 1, 1], [], []>} : vector<8x12xbf16>, vector<12x2048xbf16>, vector<8x2048xf32> -> vector<8x2048xf32>
    %c0_5 = arith.constant 0 : index
    %c0_6 = arith.constant 0 : index
    %10 = vector.load %arg3[%c0_5, %c0_6] : memref<8x1xf32, #tpu.memory_space<vmem>>, vector<8x1xf32>
    %11 = vector.broadcast %10 : vector<8x1xf32> to vector<8x2048xf32>
    %12 = arith.addf %9, %11 : vector<8x2048xf32>
    %cst_7 = arith.constant 0.000000e+00 : f32
    %13 = vector.broadcast %cst_7 : f32 to vector<8x2048xf32>
    %14 = arith.maximumf %12, %13 : vector<8x2048xf32>
    %15 = arith.truncf %14 : vector<8x2048xf32> to vector<8x2048xbf16>
    %16 = vector.extract_strided_slice %15 {offsets = [0, 1], sizes = [8, 2047], strides = [1, 1]} : vector<8x2048xbf16> to vector<8x2047xbf16>
    %cst_8 = arith.constant 0.000000e+00 : bf16
    %17 = vector.broadcast %cst_8 : bf16 to vector<8x1xbf16>
    %18 = tpu.concatenate %16, %17 in 1 : vector<8x2047xbf16>, vector<8x1xbf16> -> vector<8x2048xbf16>
    %19 = vector.extract_strided_slice %15 {offsets = [0, 2], sizes = [8, 2046], strides = [1, 1]} : vector<8x2048xbf16> to vector<8x2046xbf16>
    %cst_9 = arith.constant 0.000000e+00 : bf16
    %20 = vector.broadcast %cst_9 : bf16 to vector<8x2xbf16>
    %21 = tpu.concatenate %19, %20 in 1 : vector<8x2046xbf16>, vector<8x2xbf16> -> vector<8x2048xbf16>
    %22 = tpu.concatenate %15, %18, %21 in 0 : vector<8x2048xbf16>, vector<8x2048xbf16>, vector<8x2048xbf16> -> vector<24x2048xbf16>
    %c0_10 = arith.constant 0 : index
    %c0_11 = arith.constant 0 : index
    %23 = vector.load %arg4[%c0_10, %c0_11] : memref<16x24xbf16, #tpu.memory_space<vmem>>, vector<16x24xbf16>
    %cst_12 = arith.constant dense<0.000000e+00> : vector<16x2048xf32>
    %24 = tpu.matmul %23, %22, %cst_12 {dimension_numbers = #tpu.dot_dimension_numbers<[1], [0], [0], [1], [0, 0, 1, 1], [], []>} : vector<16x24xbf16>, vector<24x2048xbf16>, vector<16x2048xf32> -> vector<16x2048xf32>
    %c0_13 = arith.constant 0 : index
    %c0_14 = arith.constant 0 : index
    %25 = vector.load %arg5[%c0_13, %c0_14] : memref<16x3xf32, #tpu.memory_space<vmem>>, vector<16x1xf32>
    %26 = vector.broadcast %25 : vector<16x1xf32> to vector<16x2048xf32>
    %27 = arith.addf %24, %26 : vector<16x2048xf32>
    %cst_15 = arith.constant 0.000000e+00 : f32
    %28 = vector.broadcast %cst_15 : f32 to vector<16x2048xf32>
    %29 = arith.maximumf %27, %28 : vector<16x2048xf32>
    %c0_16 = arith.constant 0 : index
    %c1 = arith.constant 1 : index
    %30 = vector.load %arg5[%c0_16, %c1] : memref<16x3xf32, #tpu.memory_space<vmem>>, vector<16x1xf32>
    %31 = vector.broadcast %30 : vector<16x1xf32> to vector<16x2048xf32>
    %32 = arith.mulf %29, %31 : vector<16x2048xf32>
    %c0_17 = arith.constant 0 : index
    %c2 = arith.constant 2 : index
    %33 = vector.load %arg5[%c0_17, %c2] : memref<16x3xf32, #tpu.memory_space<vmem>>, vector<16x1xf32>
    %34 = vector.broadcast %33 : vector<16x1xf32> to vector<16x2048xf32>
    %35 = arith.addf %32, %34 : vector<16x2048xf32>
    %c0_18 = arith.constant 0 : index
    %c0_19 = arith.constant 0 : index
    %36 = vector.load %arg6[%c0_18, %c0_19] : memref<16x2048xf32, #tpu.memory_space<vmem>>, vector<16x2048xf32>
    tpu.vector_store %arg6[%c0_18, %c0_19], %35 {strides = array<i32>} : memref<16x2048xf32, #tpu.memory_space<vmem>>, vector<16x2048xf32>,
    return
  }
  func.func @transform_0(%arg0: i32) -> (i32, i32) {
    %c0_i32 = arith.constant 0 : i32
    %c0_i32_0 = arith.constant 0 : i32
    return %c0_i32, %arg0 : i32, i32
  }
  func.func @transform_1(%arg0: i32) -> (i32, i32) {
    %c0_i32 = arith.constant 0 : i32
    %c0_i32_0 = arith.constant 0 : i32
    %c0_i32_1 = arith.constant 0 : i32
    return %c0_i32, %c0_i32_0 : i32, i32
  }
  func.func @transform_2(%arg0: i32) -> (i32, i32) {
    %c0_i32 = arith.constant 0 : i32
    %c0_i32_0 = arith.constant 0 : i32
    %c0_i32_1 = arith.constant 0 : i32
    return %c0_i32, %c0_i32_0 : i32, i32
  }
  func.func @transform_3(%arg0: i32) -> (i32, i32) {
    %c0_i32 = arith.constant 0 : i32
    %c0_i32_0 = arith.constant 0 : i32
    %c0_i32_1 = arith.constant 0 : i32
    return %c0_i32, %c0_i32_0 : i32, i32
  }
  func.func @transform_4(%arg0: i32) -> (i32, i32) {
    %c0_i32 = arith.constant 0 : i32
    %c0_i32_0 = arith.constant 0 : i32
    %c0_i32_1 = arith.constant 0 : i32
    return %c0_i32, %c0_i32_0 : i32, i32
  }
  func.func @transform_5(%arg0: i32) -> (i32, i32) {
    %c0_i32 = arith.constant 0 : i32
    %c0_i32_0 = arith.constant 0 : i32
    return %c0_i32, %arg0 : i32, i32
  }
}

</mosaic_0001>

<bundles_post_ra>
// kernel: fcn_encoder_forward.1
= control target key start
LH: loop header
LB: loop body
LE: loop exit
PB: predicated region body
PF: predicated region fallthrough
CT: control target
= control target key end

     0   :  { %s1962_s18 = smov 0   ;;  %s1964_s19 = smov 0   ;;  %s2697_s0 = inlined_call_operand.vmem [shape: bf16[4,4096], index: 0, kind: input, shape index: {}]   ;;  %s2698_s1 = inlined_call_operand.vmem [shape: bf16[8,12], index: 1, kind: input, shape index: {}]   ;;  %s2699_s2 = inlined_call_operand.vmem [shape: f32[8,1], index: 2, kind: input, shape index: {}]   ;;  %s2700_s3 = inlined_call_operand.vmem [shape: bf16[16,24], index: 3, kind: input, shape index: {}]   ;;  %s2701_s4 = inlined_call_operand.vmem [shape: f32[16,3], index: 4, kind: input, shape index: {}]   ;;  %s2702_s5 = inlined_call_operand.vmem [shape: f32[16,4096], index: 5, kind: output, shape index: {}]  }
   0x1   :  { %s1966_s20 = smov 0  }
   0x2 LB: > { %s1975_s21 = sadd.s32 4294967295, %s1924_s20   ;;  %s1977_s22 = sadd.s32 1, %s1924_s20   ;;  %s1924_s20 = sphi %s1966_s20, %s2706_s20   ;;  %s1920_s19 = sphi %s1964_s19, %s2705_s19   ;;  %s1916_s18 = sphi %s1962_s18, %s2704_s18  }
   0x3   : > { %s129_s23 = ssub.s32 %s1924_s20, %s1977_s22  ;;  %s132_s24 = sadd.s32 1, %s1920_s19 }
   0x4   : > { %p130_p0 = scmp.eq.s32.totalorder %s129_s23, 0  ;;  %p142_p1 = scmp.ne.s32.totalorder %s1920_s19, %s1916_s18 }
   0x5   : > { %p143_p2 = scmp.eq.s32.totalorder %s1975_s21, 1  ;;  %p1818_p3 = scmp.ge.s32.totalorder %s1924_s20, 1 }
   0x6   : > { %s1985_s25 = scalar_select %p130_p0, %s1920_s19, %s132_s24  }
   0x7   : > { %p1987_p4 = por %p143_p2, %p142_p1  ;;  %p188_p5 = scmp.lt.s32.totalorder %s1924_s20, 3 }
   0x9   : > { %p189_p6 = pnand %p1818_p3, %p188_p5 }
   0xa   : > { %s1820_s27 = sshll.u32 (!%p189_p6), %s1975_s21, 4  ;;  %s1927_s7 = smov (!%p189_p6), 126  }
   0xb   : > { %192 = sbr.rel (%p189_p6) target bundleno = 762 (0x2fa), region = 40  ;;  %p216_p7 = scmp.lt.s32.totalorder (!%p189_p6), %s1820_s27, 31 }
   0xc   : > { %s1928_s8 = smov (!%p189_p6), 127   ;;  %s212_s23 = sand.u32 (!%p189_p6), 1, %s1916_s18  }
   0xd   : > { %s1819_s24 = sshll.u32 (!%p189_p6), %s212_s23, 8 }
   0xe   : > { %s2493_s18 = scalar_lea.vmem (!%p189_p6), [#allocation2], %s1819_s24 }
  0x10   : > { %v235_v0 = vlaneseq  ;;  %v1926_v1 = vmov 1983009808   ;;  %s2708_s27 = smov (!%p216_p7, %s1820_s27), 31  ;;  %v1929_v13 = vmov 0   ;;  %v519_v31 = vld [vmem:[%s2699_s2] sm:$0xff]  ;;  %vm331_vm0 = vcmask 1039360  }
  0x11   : > { %v233_v2 = vunpack.c.l.s4 %v1926_v1  ;;  %s1821_s28 = sshll.u32 %s2708_s27, 1  ;;  %594 = vmatprep.mubr.bf16.mxu0 %v1929_v13  ;;  %635 = vmatprep.mubr.bf16.mxu1 %v1929_v13  ;;  %vm383_vm1 = vcmask 1031168   ;;  %vm436_vm2 = vcmask 1041408   ;;  %vm485_vm3 = vcmask 1043456   ;;  %v2139_v63 = vld [vmem:[%s2698_s1] sm:$0xf] }
  0x12   : > { %v236_v3 = vshrl.u32 %v235_v0, 7  ;;  %s1995_s6 = scalar_lea.vmem %s2697_s0, %s1821_s28  ;;  %1891 = vset.pattern.permute.xlu0 %v1929_v13  ;;  %1892 = vset.pattern.permute.xlu1 %v1929_v13  ;;  %vm529_vm4 = vcmask 1045504   ;;  %vm525_vm5 = vcmask 97280   ;;  %vm1136_vm6 = vcmask 195584   ;;  %s1860_s27 = sshll.u32 (%p1987_p4), %s1975_s21, 7 }
  0x13   : > { %v234_v4 = vunpack.c.0.s8 %v233_v2  ;;  %v223_v6 = vld [vmem:[%s1995_s6] sm:$0xff]  ;;  %v224_v7 = vld [vmem:[%s1995_s6 + $0x8] sm:$0xff]  ;;  %v225_v18 = vld [vmem:[%s1995_s6 + $0x10] sm:$0xff]  ;;  %s2624_s30 = scalar_lea.vmem (%p1987_p4), %s2702_s5, %s1860_s27 }
  0x14   : > { %v231_v11 = vcombine.high %v223_v6, %v223_v6  ;;  %v248_v15 = vcombine.high %v224_v7, %v224_v7  ;;  %v265_v21 = vcombine.high %v225_v18, %v225_v18  ;;  %v226_v24 = vld [vmem:[%s1995_s6 + $0x18] sm:$0xff] }
  0x15   : > { %v237_v5 = vsub.s32 %v234_v4, %v236_v3  ;;  %v282_v27 = vcombine.high %v226_v24, %v226_v24 }
  0x17   : > { %v1999_v8 = vrot.slane %v223_v6, %v237_v5  ;;  %v2005_v9 = vrot.slane %v224_v7, %v237_v5  ;;  %v2015_v12 = vrot.slane %v231_v11, %v237_v5  ;;  %v2037_v16 = vrot.slane %v248_v15, %v237_v5 }
  0x18   : > { %v2052_v19 = vrot.slane %v225_v18, %v237_v5  ;;  %v2066_v22 = vrot.slane %v265_v21, %v237_v5  ;;  %v2081_v25 = vrot.slane %v226_v24, %v237_v5  ;;  %v2095_v28 = vrot.slane %v282_v27, %v237_v5 }
  0x19   : > { %351 = vrot.lane.b32.xlu1 %v1999_v8, %s1927_s7  ;;  %299 = vrot.lane.b32.xlu0 %v1999_v8, %s1928_s8  ;;  %v2009_v10 = vcombine.high %v1999_v8, %v1999_v8  ;;  %v2027_v14 = vcombine.high %v2015_v12, %v2015_v12  ;;  %v2041_v17 = vcombine.high %v2005_v9, %v2005_v9 }
  0x1a   : > { %v2056_v20 = vcombine.high %v2037_v16, %v2037_v16  ;;  %v2070_v23 = vcombine.high %v2052_v19, %v2052_v19  ;;  %v2085_v26 = vcombine.high %v2066_v22, %v2066_v22  ;;  %v2099_v29 = vcombine.high %v2081_v25, %v2081_v25 }
  0x1b   : > { %v2111_v30 = vcombine.high %v2095_v28, %v2095_v28 }
  0x1d   : > { %307 = vrot.lane.b32.xlu1 %v2005_v9, %s1928_s8  ;;  %301 = vrot.lane.b32.xlu0 %v2009_v10, %s1928_s8 }
  0x21   : > { %353 = vrot.lane.b32.xlu0 %v2009_v10, %s1927_s7  ;;  %303 = vrot.lane.b32.xlu1 %v2015_v12, %s1928_s8 }
  0x25   : > { %355 = vrot.lane.b32.xlu1 %v2015_v12, %s1927_s7  ;;  %305 = vrot.lane.b32.xlu0 %v2027_v14, %s1928_s8 }
  0x29   : > { %359 = vrot.lane.b32.xlu1 %v2005_v9, %s1927_s7  ;;  %357 = vrot.lane.b32.xlu0 %v2027_v14, %s1927_s7 }
  0x2d   : > { %311 = vrot.lane.b32.xlu1 %v2037_v16, %s1928_s8  ;;  %309 = vrot.lane.b32.xlu0 %v2041_v17, %s1928_s8 }
  0x31   : > { %363 = vrot.lane.b32.xlu1 %v2037_v16, %s1927_s7  ;;  %361 = vrot.lane.b32.xlu0 %v2041_v17, %s1927_s7 }
  0x35   : > { %315 = vrot.lane.b32.xlu1 %v2052_v19, %s1928_s8  ;;  %313 = vrot.lane.b32.xlu0 %v2056_v20, %s1928_s8 }
  0x39   : > { %367 = vrot.lane.b32.xlu1 %v2052_v19, %s1927_s7  ;;  %365 = vrot.lane.b32.xlu0 %v2056_v20, %s1927_s7 }
  0x3d   : > { %319 = vrot.lane.b32.xlu1 %v2066_v22, %s1928_s8  ;;  %317 = vrot.lane.b32.xlu0 %v2070_v23, %s1928_s8 }
  0x41   : > { %371 = vrot.lane.b32.xlu1 %v2066_v22, %s1927_s7  ;;  %369 = vrot.lane.b32.xlu0 %v2070_v23, %s1927_s7 }
  0x45   : > { %323 = vrot.lane.b32.xlu1 %v2081_v25, %s1928_s8  ;;  %321 = vrot.lane.b32.xlu0 %v2085_v26, %s1928_s8 }
  0x49   : > { %375 = vrot.lane.b32.xlu1 %v2081_v25, %s1927_s7  ;;  %373 = vrot.lane.b32.xlu0 %v2085_v26, %s1927_s7 }
  0x4d   : > { %327 = vrot.lane.b32.xlu1 %v2095_v28, %s1928_s8  ;;  %325 = vrot.lane.b32.xlu0 %v2099_v29, %s1928_s8 }
  0x51   : > { %379 = vrot.lane.b32.xlu1 %v2095_v28, %s1927_s7  ;;  %377 = vrot.lane.b32.xlu0 %v2099_v29, %s1927_s7 }
  0x55   : > { %381 = vrot.lane.b32.xlu1 %v2111_v30, %s1927_s7  ;;  %329 = vrot.lane.b32.xlu0 %v2111_v30, %s1928_s8 }
  0x59   : > { %522 = vperm.xlu0 %1891, %v519_v31  }
  0x8b   : > { %v352_v32 = vpop.permute.xlu1 %351  ;;  %v300_v33 = vpop.permute.xlu0 %299 }
  0x8f   : > { %v308_v34 = vpop.permute.xlu1 %307  ;;  %v302_v35 = vpop.permute.xlu0 %301 }
  0x90   : > { %v332_v36 = vsel %vm331_vm0, %v300_v33, %v302_v35 }
  0x91   : > { %v403_v39 = vrot.slane %v332_v36, 6 }
  0x93   : > { %v354_v37 = vpop.permute.xlu0 %353  ;;  %v304_v38 = vpop.permute.xlu1 %303  ;;  %v439_v49 = vsel %vm436_vm2, %v1999_v8, %v403_v39 }
  0x94   : > { %v384_v40 = vsel %vm383_vm1, %v352_v32, %v354_v37  ;;  %v333_v41 = vsel %vm331_vm0, %v302_v35, %v304_v38 }
  0x95   : > { %v420_v42 = vrot.slane %v384_v40, 4  ;;  %v404_v43 = vrot.slane %v333_v41, 6 }
  0x97   : > { %v356_v44 = vpop.permute.xlu1 %355  ;;  %v306_v45 = vpop.permute.xlu0 %305  ;;  %v487_v51 = vsel %vm485_vm3, %v439_v49, %v420_v42  ;;  %v442_v54 = vsel %vm436_vm2, %v2009_v10, %v404_v43 }
  0x98   : > { %v385_v46 = vsel %vm383_vm1, %v354_v37, %v356_v44  ;;  %v334_v47 = vsel %vm331_vm0, %v304_v38, %v306_v45  ;;  %v335_v48 = vsel %vm331_vm0, %v306_v45, %v308_v34  ;;  %v530_v60 = vsel %vm529_vm4, %v487_v51, 0 }
  0x99   : > { %v421_v50 = vrot.slane %v385_v46, 4  ;;  %v405_v52 = vrot.slane %v334_v47, 6  ;;  %v406_v53 = vrot.slane %v335_v48, 6 }
  0x9b   : > { %v360_v55 = vpop.permute.xlu1 %359  ;;  %v358_v56 = vpop.permute.xlu0 %357  ;;  %v489_v57 = vsel %vm485_vm3, %v442_v54, %v421_v50  ;;  %v448_v0 = vsel %vm436_vm2, %v2027_v14, %v406_v53  ;;  %v445_v1 = vsel %vm436_vm2, %v2015_v12, %v405_v52 }
  0x9c   : > { %v386_v58 = vsel %vm383_vm1, %v356_v44, %v358_v56  ;;  %v387_v59 = vsel %vm383_vm1, %v358_v56, %v360_v55  ;;  %1822 = vmatprep.subr.msk.bf16.mxu0 %vm529_vm4, %v489_v57 }
  0x9d   : > { %v422_v61 = vrot.slane %v386_v58, 4  ;;  %v423_v62 = vrot.slane %v387_v59, 4  ;;  %577 = vmatpush1.bf16.msra.mxu0 %v530_v60 }
  0x9f   : > { %v312_v2 = vpop.permute.xlu1 %311  ;;  %v310_v3 = vpop.permute.xlu0 %309  ;;  %v493_v4 = vsel %vm485_vm3, %v448_v0, %v423_v62  ;;  %v491_v5 = vsel %vm485_vm3, %v445_v1, %v422_v61 }
  0xa0   : > { %v336_v6 = vsel %vm331_vm0, %v308_v34, %v310_v3  ;;  %v337_v7 = vsel %vm331_vm0, %v310_v3, %v312_v2  ;;  %1823 = vmatmul.mubr.msk.bf16.vlgmr.msra.gmra.mxu0 %vm525_vm5, %v2139_v63  ;;  %1824 = vmatprep.subr.msk.bf16.mxu1 %vm529_vm4, %v493_v4  ;;  %v534_v8 = vsel %vm529_vm4, %v491_v5, 0 }
  0xa1   : > { %v408_v10 = vrot.slane %v337_v7, 6  ;;  %618 = vmatpush1.bf16.msra.mxu1 %v534_v8  ;;  %676 = vmatprep.mubr.bf16.mxu0 %v1929_v13  ;;  %v407_v11 = vrot.slane %v336_v6, 6 }
  0xa3   : > { %v364_v12 = vpop.permute.xlu1 %363  ;;  %v362_v14 = vpop.permute.xlu0 %361  ;;  %v454_v21 = vsel %vm436_vm2, %v2041_v17, %v408_v10  ;;  %v451_v31 = vsel %vm436_vm2, %v2005_v9, %v407_v11 }
  0xa4   : > { %v388_v15 = vsel %vm383_vm1, %v360_v55, %v362_v14  ;;  %v389_v18 = vsel %vm383_vm1, %v362_v14, %v364_v12  ;;  %1825 = vmatmul.mubr.msk.bf16.vlgmr.msra.gmra.mxu1 %vm525_vm5, %v2139_v63 }
  0xa5   : > { %v424_v24 = vrot.slane %v388_v15, 4  ;;  %v425_v27 = vrot.slane %v389_v18, 4  ;;  %717 = vmatprep.mubr.bf16.mxu1 %v1929_v13 }
  0xa7   : > { %v316_v32 = vpop.permute.xlu1 %315  ;;  %v314_v33 = vpop.permute.xlu0 %313  ;;  %v497_v34 = vsel %vm485_vm3, %v454_v21, %v425_v27  ;;  %v495_v35 = vsel %vm485_vm3, %v451_v31, %v424_v24 }
  0xa8   : > { %v338_v36 = vsel %vm331_vm0, %v312_v2, %v314_v33  ;;  %v339_v37 = vsel %vm331_vm0, %v314_v33, %v316_v32  ;;  %1826 = vmatprep.subr.msk.bf16.mxu0 %vm529_vm4, %v497_v34  ;;  %v538_v17 = vsel %vm529_vm4, %v495_v35, 0 }
  0xa9   : > { %v410_v38 = vrot.slane %v339_v37, 6  ;;  %659 = vmatpush1.bf16.msra.mxu0 %v538_v17  ;;  %v409_v39 = vrot.slane %v338_v36, 6 }
  0xab   : > { %v368_v40 = vpop.permute.xlu1 %367  ;;  %v366_v41 = vpop.permute.xlu0 %365  ;;  %v460_v43 = vsel %vm436_vm2, %v2056_v20, %v410_v38  ;;  %v457_v46 = vsel %vm436_vm2, %v2037_v16, %v409_v39 }
  0xac   : > { %v390_v9 = vsel %vm383_vm1, %v364_v12, %v366_v41  ;;  %v391_v42 = vsel %vm383_vm1, %v366_v41, %v368_v40  ;;  %1827 = vmatmul.mubr.msk.bf16.vlgmr.msra.gmra.mxu0 %vm525_vm5, %v2139_v63 }
  0xad   : > { %v426_v44 = vrot.slane %v390_v9, 4  ;;  %v427_v45 = vrot.slane %v391_v42, 4  ;;  %758 = vmatprep.mubr.bf16.mxu0 %v1929_v13 }
  0xaf   : > { %v320_v47 = vpop.permute.xlu1 %319  ;;  %v318_v48 = vpop.permute.xlu0 %317  ;;  %v501_v49 = vsel %vm485_vm3, %v460_v43, %v427_v45  ;;  %v499_v50 = vsel %vm485_vm3, %v457_v46, %v426_v44 }
  0xb0   : > { %v340_v51 = vsel %vm331_vm0, %v316_v32, %v318_v48  ;;  %v341_v52 = vsel %vm331_vm0, %v318_v48, %v320_v47  ;;  %1828 = vmatprep.subr.msk.bf16.mxu1 %vm529_vm4, %v501_v49  ;;  %v542_v20 = vsel %vm529_vm4, %v499_v50, 0 }
  0xb1   : > { %v412_v53 = vrot.slane %v341_v52, 6  ;;  %700 = vmatpush1.bf16.msra.mxu1 %v542_v20  ;;  %v411_v54 = vrot.slane %v340_v51, 6 }
  0xb3   : > { %v372_v55 = vpop.permute.xlu1 %371  ;;  %v370_v56 = vpop.permute.xlu0 %369  ;;  %v466_v58 = vsel %vm436_vm2, %v2070_v23, %v412_v53  ;;  %v463_v61 = vsel %vm436_vm2, %v2052_v19, %v411_v54 }
  0xb4   : > { %v392_v16 = vsel %vm383_vm1, %v368_v40, %v370_v56  ;;  %v393_v57 = vsel %vm383_vm1, %v370_v56, %v372_v55  ;;  %1829 = vmatmul.mubr.msk.bf16.vlgmr.msra.gmra.mxu1 %vm525_vm5, %v2139_v63 }
  0xb5   : > { %v428_v59 = vrot.slane %v392_v16, 4  ;;  %v429_v60 = vrot.slane %v393_v57, 4  ;;  %799 = vmatprep.mubr.bf16.mxu1 %v1929_v13 }
  0xb7   : > { %v324_v62 = vpop.permute.xlu1 %323  ;;  %v322_v0 = vpop.permute.xlu0 %321  ;;  %v505_v1 = vsel %vm485_vm3, %v466_v58, %v429_v60  ;;  %v503_v2 = vsel %vm485_vm3, %v463_v61, %v428_v59 }
  0xb8   : > { %v342_v3 = vsel %vm331_vm0, %v320_v47, %v322_v0  ;;  %v343_v4 = vsel %vm331_vm0, %v322_v0, %v324_v62  ;;  %1830 = vmatprep.subr.msk.bf16.mxu0 %vm529_vm4, %v505_v1  ;;  %v546_v23 = vsel %vm529_vm4, %v503_v2, 0 }
  0xb9   : > { %v414_v5 = vrot.slane %v343_v4, 6  ;;  %741 = vmatpush1.bf16.msra.mxu0 %v546_v23  ;;  %v413_v6 = vrot.slane %v342_v3, 6 }
  0xbb   : > { %v376_v7 = vpop.permute.xlu1 %375  ;;  %v374_v8 = vpop.permute.xlu0 %373  ;;  %v472_v11 = vsel %vm436_vm2, %v2085_v26, %v414_v5  ;;  %v469_v15 = vsel %vm436_vm2, %v2066_v22, %v413_v6 }
  0xbc   : > { %v394_v19 = vsel %vm383_vm1, %v372_v55, %v374_v8  ;;  %v395_v10 = vsel %vm383_vm1, %v374_v8, %v376_v7  ;;  %1831 = vmatmul.mubr.msk.bf16.vlgmr.msra.gmra.mxu0 %vm525_vm5, %v2139_v63 }
  0xbd   : > { %v430_v12 = vrot.slane %v394_v19, 4  ;;  %v431_v14 = vrot.slane %v395_v10, 4  ;;  %840 = vmatprep.mubr.bf16.mxu0 %v1929_v13 }
  0xbf   : > { %v328_v18 = vpop.permute.xlu1 %327  ;;  %v326_v21 = vpop.permute.xlu0 %325  ;;  %v509_v24 = vsel %vm485_vm3, %v472_v11, %v431_v14  ;;  %v507_v27 = vsel %vm485_vm3, %v469_v15, %v430_v12 }
  0xc0   : > { %v344_v31 = vsel %vm331_vm0, %v324_v62, %v326_v21  ;;  %v345_v32 = vsel %vm331_vm0, %v326_v21, %v328_v18  ;;  %1832 = vmatprep.subr.msk.bf16.mxu1 %vm529_vm4, %v509_v24  ;;  %v550_v26 = vsel %vm529_vm4, %v507_v27, 0 }
  0xc1   : > { %v416_v33 = vrot.slane %v345_v32, 6  ;;  %782 = vmatpush1.bf16.msra.mxu1 %v550_v26  ;;  %v415_v34 = vrot.slane %v344_v31, 6 }
  0xc3   : > { %v380_v35 = vpop.permute.xlu1 %379  ;;  %v378_v36 = vpop.permute.xlu0 %377  ;;  %v478_v17 = vsel %vm436_vm2, %v2099_v29, %v416_v33  ;;  %v475_v40 = vsel %vm436_vm2, %v2081_v25, %v415_v34 }
  0xc4   : > { %v396_v22 = vsel %vm383_vm1, %v376_v7, %v378_v36  ;;  %v397_v37 = vsel %vm383_vm1, %v378_v36, %v380_v35  ;;  %1833 = vmatmul.mubr.msk.bf16.vlgmr.msra.gmra.mxu1 %vm525_vm5, %v2139_v63 }
  0xc5   : > { %v432_v38 = vrot.slane %v396_v22, 4  ;;  %v433_v39 = vrot.slane %v397_v37, 4  ;;  %881 = vmatprep.mubr.bf16.mxu1 %v1929_v13 }
  0xc7   : > { %v382_v41 = vpop.permute.xlu1 %381  ;;  %v330_v9 = vpop.permute.xlu0 %329  ;;  %v513_v42 = vsel %vm485_vm3, %v478_v17, %v433_v39  ;;  %v511_v43 = vsel %vm485_vm3, %v475_v40, %v432_v38 }
  0xc8   : > { %v398_v44 = vsel %vm383_vm1, %v380_v35, %v382_v41  ;;  %v401_v45 = vsel %vm383_vm1, %v382_v41, 0  ;;  %v346_v46 = vsel %vm331_vm0, %v328_v18, %v330_v9  ;;  %v350_v29 = vsel %vm331_vm0, %v330_v9, 0  ;;  %1834 = vmatprep.subr.msk.bf16.mxu0 %vm529_vm4, %v513_v42 }
  0xc9   : > { %v434_v47 = vrot.slane %v398_v44, 4  ;;  %v435_v48 = vrot.slane %v401_v45, 4  ;;  %v417_v49 = vrot.slane %v346_v46, 6  ;;  %v418_v25 = vrot.slane %v350_v29, 6 }
  0xca   : > { %v554_v50 = vsel %vm529_vm4, %v511_v43, 0 }
  0xcb   : > { %v481_v51 = vsel %vm436_vm2, %v2095_v28, %v417_v49  ;;  %823 = vmatpush1.bf16.msra.mxu0 %v554_v50  ;;  %v484_v52 = vsel %vm436_vm2, %v2111_v30, %v418_v25 }
  0xcc   : > { %v517_v20 = vsel %vm485_vm3, %v484_v52, %v435_v48  ;;  %v515_v53 = vsel %vm485_vm3, %v481_v51, %v434_v47 }
  0xcd   : > { %1836 = vmatprep.subr.msk.bf16.mxu1 %vm529_vm4, %v517_v20  ;;  %v558_v54 = vsel %vm529_vm4, %v515_v53, 0 }
  0xce   : > { %1835 = vmatmul.mubr.msk.bf16.vlgmr.msra.gmra.mxu0 %vm525_vm5, %v2139_v63  ;;  %864 = vmatpush1.bf16.msra.mxu1 %v558_v54 }
  0xcf   : > { %1219 = vmatprep.mubr.bf16.mxu0 %v1929_v13 }
  0xd1   : > { %1837 = vmatmul.mubr.msk.bf16.vlgmr.msra.gmra.mxu1 %vm525_vm5, %v2139_v63 }
  0xd2   : > { %1262 = vmatprep.mubr.bf16.mxu1 %v1929_v13 }
  0xd4   : > { %v2245_v28 = vpop.permute.xlu0 %522 }
 0x160   : > { %v596_v30 = vpop.f32.mrf.mxu0 }
 0x161   : > { %v597_v55 = vadd.f32 %v596_v30, %v2245_v28 }
 0x162   : > { %v598_v56 = vpop.f32.mrf.mxu0 }
 0x163   : > { %v890_v16 = vmax.f32 %v597_v55, 0.0  ;;  %v599_v59 = vadd.f32 %v598_v56, %v2245_v28 }
 0x164   : > { %v600_v57 = vpop.f32.mrf.mxu0  ;;  %v637_v58 = vpop.f32.mrf.mxu1 }
 0x165   : > { %v638_v60 = vadd.f32 %v637_v58, %v2245_v28  ;;  %v2250_v61 = vpack.c.bf16 %v890_v16, %v890_v16  ;;  %v891_v2 = vmax.f32 %v599_v59, 0.0 }
 0x166   : > { %v601_v62 = vpop.f32.mrf.mxu0  ;;  %v639_v0 = vpop.f32.mrf.mxu1 }
 0x167   : > { %v892_v63 = vmax.f32 %v638_v60, 0.0  ;;  %987 = vrot.lane.b32.xlu1 %v2250_v61, %s1927_s7  ;;  %v2260_v5 = vpack.c.bf16 %v891_v2, %v891_v2  ;;  %v640_v6 = vadd.f32 %v639_v0, %v2245_v28 }
 0x168   : > { %v641_v1 = vpop.f32.mrf.mxu1 }
 0x169   : > { %v2254_v3 = vpack.c.bf16 %v892_v63, %v892_v63  ;;  %v893_v11 = vmax.f32 %v640_v6, 0.0 }
 0x16a   : > { %v642_v4 = vpop.f32.mrf.mxu1 }
 0x16b   : > { %991 = vrot.lane.b32.xlu0 %v2254_v3, %s1927_s7  ;;  %938 = vrot.lane.b32.xlu1 %v2250_v61, %s1928_s8  ;;  %v2275_v21 = vpack.c.bf16 %v893_v11, %v893_v11  ;;  %v1931_v11 = vmov 2  }
 0x16c   : > { %v678_v23 = vpop.f32.mrf.mxu0 }
 0x16d   : > { %v679_v7 = vadd.f32 %v678_v23, %v2245_v28 }
 0x16e   : > { %v680_v8 = vpop.f32.mrf.mxu0 }
 0x16f   : > { %v894_v19 = vmax.f32 %v679_v7, 0.0  ;;  %942 = vrot.lane.b32.xlu0 %v2254_v3, %s1928_s8  ;;  %989 = vrot.lane.b32.xlu1 %v2260_v5, %s1927_s7  ;;  %v681_v14 = vadd.f32 %v680_v8, %v2245_v28  ;;  %v1119_v8 = vld [vmem:[%s2701_s4] sm:$0xff] }
 0x170   : > { %v682_v10 = vpop.f32.mrf.mxu0 }
 0x171   : > { %v2268_v12 = vpack.c.bf16 %v894_v19, %v894_v19  ;;  %v895_v24 = vmax.f32 %v681_v14, 0.0  ;;  %v1120_v19 = vld [vmem:[%s2701_s4 + $0x8] sm:$0xff]  ;;  %v1930_v10 = vmov 1  }
 0x172   : > { %v683_v15 = vpop.f32.mrf.mxu0 }
 0x173   : > { %995 = vrot.lane.b32.xlu0 %v2268_v12, %s1927_s7  ;;  %940 = vrot.lane.b32.xlu1 %v2260_v5, %s1928_s8  ;;  %v2282_v26 = vpack.c.bf16 %v895_v24, %v895_v24 }
 0x174   : > { %v719_v18 = vpop.f32.mrf.mxu1 }
 0x175   : > { %v720_v27 = vadd.f32 %v719_v18, %v2245_v28 }
 0x176   : > { %v721_v31 = vpop.f32.mrf.mxu1 }
 0x177   : > { %946 = vrot.lane.b32.xlu0 %v2268_v12, %s1928_s8  ;;  %993 = vrot.lane.b32.xlu1 %v2275_v21, %s1927_s7  ;;  %v896_v33 = vmax.f32 %v720_v27, 0.0  ;;  %v722_v34 = vadd.f32 %v721_v31, %v2245_v28 }
 0x178   : > { %v723_v32 = vpop.f32.mrf.mxu1 }
 0x179   : > { %v2289_v22 = vpack.c.bf16 %v896_v33, %v896_v33  ;;  %v897_v37 = vmax.f32 %v722_v34, 0.0 }
 0x17a   : > { %v724_v35 = vpop.f32.mrf.mxu1 }
 0x17b   : > { %997 = vrot.lane.b32.xlu0 %v2282_v26, %s1927_s7  ;;  %944 = vrot.lane.b32.xlu1 %v2275_v21, %s1928_s8  ;;  %v2296_v40 = vpack.c.bf16 %v897_v37, %v897_v37 }
 0x17c   : > { %v760_v36 = vpop.f32.mrf.mxu0 }
 0x17d   : > { %v761_v17 = vadd.f32 %v760_v36, %v2245_v28 }
 0x17e   : > { %v762_v38 = vpop.f32.mrf.mxu0 }
 0x17f   : > { %948 = vrot.lane.b32.xlu0 %v2282_v26, %s1928_s8  ;;  %999 = vrot.lane.b32.xlu1 %v2289_v22, %s1927_s7  ;;  %v898_v41 = vmax.f32 %v761_v17, 0.0  ;;  %v763_v9 = vadd.f32 %v762_v38, %v2245_v28 }
 0x180   : > { %v764_v39 = vpop.f32.mrf.mxu0 }
 0x181   : > { %v2303_v44 = vpack.c.bf16 %v898_v41, %v898_v41  ;;  %v899_v45 = vmax.f32 %v763_v9, 0.0 }
 0x182   : > { %v765_v42 = vpop.f32.mrf.mxu0 }
 0x183   : > { %1001 = vrot.lane.b32.xlu0 %v2296_v40, %s1927_s7  ;;  %950 = vrot.lane.b32.xlu1 %v2289_v22, %s1928_s8  ;;  %v2310_v48 = vpack.c.bf16 %v899_v45, %v899_v45 }
 0x184   : > { %v801_v43 = vpop.f32.mrf.mxu1 }
 0x185   : > { %v802_v46 = vadd.f32 %v801_v43, %v2245_v28 }
 0x186   : > { %v803_v29 = vpop.f32.mrf.mxu1 }
 0x187   : > { %952 = vrot.lane.b32.xlu0 %v2296_v40, %s1928_s8  ;;  %1003 = vrot.lane.b32.xlu1 %v2303_v44, %s1927_s7  ;;  %v900_v49 = vmax.f32 %v802_v46, 0.0  ;;  %v804_v25 = vadd.f32 %v803_v29, %v2245_v28  ;;  %v2380_v46 = vld [vmem:[%s2700_s3] sm:$0xff]  }
 0x188   : > { %v805_v47 = vpop.f32.mrf.mxu1 }
 0x189   : > { %v2317_v51 = vpack.c.bf16 %v900_v49, %v900_v49  ;;  %v901_v52 = vmax.f32 %v804_v25, 0.0 }
 0x18a   : > { %v806_v50 = vpop.f32.mrf.mxu1 }
 0x18b   : > { %1005 = vrot.lane.b32.xlu0 %v2310_v48, %s1927_s7  ;;  %954 = vrot.lane.b32.xlu1 %v2303_v44, %s1928_s8  ;;  %v2324_v30 = vpack.c.bf16 %v901_v52, %v901_v52 }
 0x18e   : > { %v842_v20 = vpop.f32.mrf.mxu0 }
 0x18f   : > { %v843_v53 = vadd.f32 %v842_v20, %v2245_v28  ;;  %956 = vrot.lane.b32.xlu0 %v2310_v48, %s1928_s8  ;;  %1007 = vrot.lane.b32.xlu1 %v2317_v51, %s1927_s7 }
 0x190   : > { %v844_v54 = vpop.f32.mrf.mxu0 }
 0x191   : > { %v902_v55 = vmax.f32 %v843_v53, 0.0  ;;  %v845_v56 = vadd.f32 %v844_v54, %v2245_v28  ;;  %v883_v16 = vpop.f32.mrf.mxu1 }
 0x192   : > { %v846_v57 = vpop.f32.mrf.mxu0  ;;  %v884_v0 = vadd.f32 %v883_v16, %v2245_v28 }
 0x193   : > { %v885_v58 = vpop.f32.mrf.mxu1  ;;  %1009 = vrot.lane.b32.xlu0 %v2324_v30, %s1927_s7  ;;  %958 = vrot.lane.b32.xlu1 %v2317_v51, %s1928_s8  ;;  %v2331_v60 = vpack.c.bf16 %v902_v55, %v902_v55  ;;  %v903_v62 = vmax.f32 %v845_v56, 0.0 }
 0x194   : > { %v847_v59 = vpop.f32.mrf.mxu0  ;;  %v886_v63 = vadd.f32 %v885_v58, %v2245_v28  ;;  %v904_v23 = vmax.f32 %v884_v0, 0.0 }
 0x195   : > { %v887_v1 = vpop.f32.mrf.mxu1  ;;  %v2339_v4 = vpack.c.bf16 %v903_v62, %v903_v62 }
 0x196   : > { %v905_v6 = vmax.f32 %v886_v63, 0.0  ;;  %v2345_v7 = vpack.c.bf16 %v904_v23, %v904_v23 }
 0x197   : > { %960 = vrot.lane.b32.xlu0 %v2324_v30, %s1928_s8  ;;  %1011 = vrot.lane.b32.xlu1 %v2331_v60, %s1927_s7  ;;  %v888_v2 = vpop.f32.mrf.mxu1 }
 0x198   : > { %v2347_v28 = vpack.c.bf16 %v905_v6, %v905_v6 }
 0x19b   : > { %1013 = vrot.lane.b32.xlu0 %v2339_v4, %s1927_s7  ;;  %962 = vrot.lane.b32.xlu1 %v2331_v60, %s1928_s8 }
 0x19f   : > { %1017 = vrot.lane.b32.xlu0 %v2347_v28, %s1927_s7  ;;  %1015 = vrot.lane.b32.xlu1 %v2345_v7, %s1927_s7 }
 0x1a3   : > { %966 = vrot.lane.b32.xlu0 %v2345_v7, %s1928_s8  ;;  %964 = vrot.lane.b32.xlu1 %v2339_v4, %s1928_s8 }
 0x1a7   : > { %1123 = vperm.xlu0 %1891, %v1119_v8   ;;  %968 = vrot.lane.b32.xlu1 %v2347_v28, %s1928_s8 }
 0x1ab   : > { %1128 = vperm.xlu1 %1892, %v1120_v19   ;;  %1893 = vset.pattern.permute.xlu0 %v1930_v10 }
 0x1ac   : > { %1564 = vperm.xlu0 %1893, %v1119_v8  }
 0x1af   : > { %1894 = vset.pattern.permute.xlu1 %v1930_v10 }
 0x1b0   : > { %1568 = vperm.xlu1 %1894, %v1120_v19   ;;  %1896 = vset.pattern.permute.xlu0 %v1931_v11 }
 0x1b1   : > { %1608 = vperm.xlu0 %1896, %v1120_v19  }
 0x1b4   : > { %1895 = vset.pattern.permute.xlu1 %v1931_v11 }
 0x1b5   : > { %1604 = vperm.xlu1 %1895, %v1119_v8  }
 0x1d9   : > { %v988_v14 = vpop.permute.xlu1 %987 }
 0x1dd   : > { %v992_v15 = vpop.permute.xlu0 %991  ;;  %v939_v18 = vpop.permute.xlu1 %938 }
 0x1e1   : > { %v943_v24 = vpop.permute.xlu0 %942  ;;  %v990_v27 = vpop.permute.xlu1 %989 }
 0x1e2   : > { %v1019_v31 = vsel %vm383_vm1, %v988_v14, %v990_v27  ;;  %v1020_v32 = vsel %vm383_vm1, %v990_v27, %v992_v15 }
 0x1e3   : > { %v1141_v33 = vsel %vm485_vm3, %v1019_v31, 0  ;;  %1839 = vmatprep.subr.msk.bf16.mxu0 %vm485_vm3, %v1020_v32 }
 0x1e4   : > { %1200 = vmatpush1.bf16.msra.mxu0 %v1141_v33 }
 0x1e5   : > { %v996_v34 = vpop.permute.xlu0 %995  ;;  %v941_v35 = vpop.permute.xlu1 %940 }
 0x1e6   : > { %v970_v36 = vsel %vm331_vm0, %v939_v18, %v941_v35  ;;  %v971_v37 = vsel %vm331_vm0, %v941_v35, %v943_v24 }
 0x1e7   : > { %v1037_v17 = vrot.slane %v970_v36, 4  ;;  %v1038_v38 = vrot.slane %v971_v37, 4 }
 0x1e9   : > { %v947_v39 = vpop.permute.xlu0 %946  ;;  %v994_v41 = vpop.permute.xlu1 %993  ;;  %v1059_v9 = vsel %vm485_vm3, %v2260_v5, %v1038_v38  ;;  %v1055_v42 = vsel %vm485_vm3, %v2250_v61, %v1037_v17 }
 0x1ea   : > { %v1021_v43 = vsel %vm383_vm1, %v992_v15, %v994_v41  ;;  %v1022_v45 = vsel %vm383_vm1, %v994_v41, %v996_v34  ;;  %1201 = vmatprep.subr.bf16.mxu0 %v1059_v9 }
 0x1eb   : > { %v1147_v29 = vsel %vm485_vm3, %v1021_v43, 0  ;;  %1202 = vmatpush1.bf16.msra.mxu0 %v1055_v42  ;;  %1841 = vmatprep.subr.msk.bf16.mxu1 %vm485_vm3, %v1022_v45 }
 0x1ec   : > { %1243 = vmatpush1.bf16.msra.mxu1 %v1147_v29 }
 0x1ed   : > { %v998_v5 = vpop.permute.xlu0 %997  ;;  %v945_v47 = vpop.permute.xlu1 %944 }
 0x1ee   : > { %v972_v61 = vsel %vm331_vm0, %v943_v24, %v945_v47  ;;  %v973_v49 = vsel %vm331_vm0, %v945_v47, %v947_v39  ;;  %1840 = vmatmul.mubr.msk.bf16.vlgmr.msra.gmra.mxu0 %vm1136_vm6, %v2380_v46  ;;  %v1023_v52 = vsel %vm383_vm1, %v996_v34, %v998_v5 }
 0x1ef   : > { %v1039_v25 = vrot.slane %v972_v61, 4  ;;  %v1040_v50 = vrot.slane %v973_v49, 4  ;;  %1305 = vmatprep.mubr.bf16.mxu0 %v1929_v13  ;;  %v1153_v16 = vsel %vm485_vm3, %v1023_v52, 0 }
 0x1f1   : > { %v949_v20 = vpop.permute.xlu0 %948  ;;  %v1000_v53 = vpop.permute.xlu1 %999  ;;  %v1067_v54 = vsel %vm485_vm3, %v2275_v21, %v1040_v50  ;;  %v1063_v55 = vsel %vm485_vm3, %v2254_v3, %v1039_v25 }
 0x1f2   : > { %v1024_v56 = vsel %vm383_vm1, %v998_v5, %v1000_v53  ;;  %1244 = vmatprep.subr.bf16.mxu1 %v1067_v54  ;;  %v974_v57 = vsel %vm331_vm0, %v947_v39, %v949_v20 }
 0x1f3   : > { %1245 = vmatpush1.bf16.msra.mxu1 %v1063_v55  ;;  %1843 = vmatprep.subr.msk.bf16.mxu0 %vm485_vm3, %v1024_v56  ;;  %v1041_v62 = vrot.slane %v974_v57, 4 }
 0x1f4   : > { %1286 = vmatpush1.bf16.msra.mxu0 %v1153_v16 }
 0x1f5   : > { %v1002_v58 = vpop.permute.xlu0 %1001  ;;  %v951_v59 = vpop.permute.xlu1 %950  ;;  %v1071_v6 = vsel %vm485_vm3, %v2268_v12, %v1041_v62 }
 0x1f6   : > { %v975_v0 = vsel %vm331_vm0, %v949_v20, %v951_v59  ;;  %1842 = vmatmul.mubr.msk.bf16.vlgmr.msra.gmra.mxu1 %vm1136_vm6, %v2380_v46  ;;  %v1025_v21 = vsel %vm383_vm1, %v1000_v53, %v1002_v58 }
 0x1f7   : > { %v1042_v3 = vrot.slane %v975_v0, 4  ;;  %1348 = vmatprep.mubr.bf16.mxu1 %v1929_v13  ;;  %v1159_v8 = vsel %vm485_vm3, %v1025_v21, 0 }
 0x1f9   : > { %v953_v63 = vpop.permute.xlu0 %952  ;;  %v1004_v1 = vpop.permute.xlu1 %1003  ;;  %v1075_v2 = vsel %vm485_vm3, %v2282_v26, %v1042_v3 }
 0x1fa   : > { %v1026_v23 = vsel %vm383_vm1, %v1002_v58, %v1004_v1  ;;  %1287 = vmatprep.subr.bf16.mxu0 %v1075_v2  ;;  %v976_v19 = vsel %vm331_vm0, %v951_v59, %v953_v63 }
 0x1fb   : > { %1288 = vmatpush1.bf16.msra.mxu0 %v1071_v6  ;;  %1845 = vmatprep.subr.msk.bf16.mxu1 %vm485_vm3, %v1026_v23  ;;  %v1043_v14 = vrot.slane %v976_v19, 4 }
 0x1fc   : > { %1329 = vmatpush1.bf16.msra.mxu1 %v1159_v8 }
 0x1fd   : > { %v1006_v10 = vpop.permute.xlu0 %1005  ;;  %v955_v11 = vpop.permute.xlu1 %954  ;;  %v1079_v32 = vsel %vm485_vm3, %v2289_v22, %v1043_v14 }
 0x1fe   : > { %v977_v15 = vsel %vm331_vm0, %v953_v63, %v955_v11  ;;  %1844 = vmatmul.mubr.msk.bf16.vlgmr.msra.gmra.mxu0 %vm1136_vm6, %v2380_v46  ;;  %v1027_v12 = vsel %vm383_vm1, %v1004_v1, %v1006_v10 }
 0x1ff   : > { %v1044_v26 = vrot.slane %v977_v15, 4  ;;  %1391 = vmatprep.mubr.bf16.mxu0 %v1929_v13  ;;  %v1165_v33 = vsel %vm485_vm3, %v1027_v12, 0 }
 0x201   : > { %v957_v18 = vpop.permute.xlu0 %956  ;;  %v1008_v24 = vpop.permute.xlu1 %1007  ;;  %v1083_v27 = vsel %vm485_vm3, %v2296_v40, %v1044_v26 }
 0x202   : > { %v1028_v31 = vsel %vm383_vm1, %v1006_v10, %v1008_v24  ;;  %1330 = vmatprep.subr.bf16.mxu1 %v1083_v27  ;;  %v978_v34 = vsel %vm331_vm0, %v955_v11, %v957_v18 }
 0x203   : > { %1331 = vmatpush1.bf16.msra.mxu1 %v1079_v32  ;;  %1847 = vmatprep.subr.msk.bf16.mxu0 %vm485_vm3, %v1028_v31  ;;  %v1045_v37 = vrot.slane %v978_v34, 4 }
 0x204   : > { %1372 = vmatpush1.bf16.msra.mxu0 %v1165_v33 }
 0x205   : > { %v1010_v35 = vpop.permute.xlu0 %1009  ;;  %v959_v36 = vpop.permute.xlu1 %958  ;;  %v1087_v42 = vsel %vm485_vm3, %v2303_v44, %v1045_v37 }
 0x206   : > { %v979_v17 = vsel %vm331_vm0, %v957_v18, %v959_v36  ;;  %1846 = vmatmul.mubr.msk.bf16.vlgmr.msra.gmra.mxu1 %vm1136_vm6, %v2380_v46  ;;  %v1029_v22 = vsel %vm383_vm1, %v1008_v24, %v1010_v35 }
 0x207   : > { %v1046_v40 = vrot.slane %v979_v17, 4  ;;  %1434 = vmatprep.mubr.bf16.mxu1 %v1929_v13  ;;  %v1171_v43 = vsel %vm485_vm3, %v1029_v22, 0 }
 0x209   : > { %v961_v38 = vpop.permute.xlu0 %960  ;;  %v1012_v39 = vpop.permute.xlu1 %1011  ;;  %v1091_v41 = vsel %vm485_vm3, %v2310_v48, %v1046_v40 }
 0x20a   : > { %v1030_v9 = vsel %vm383_vm1, %v1010_v35, %v1012_v39  ;;  %1373 = vmatprep.subr.bf16.mxu0 %v1091_v41  ;;  %v980_v45 = vsel %vm331_vm0, %v959_v36, %v961_v38 }
 0x20b   : > { %1374 = vmatpush1.bf16.msra.mxu0 %v1087_v42  ;;  %1849 = vmatprep.subr.msk.bf16.mxu1 %vm485_vm3, %v1030_v9  ;;  %v1047_v47 = vrot.slane %v980_v45, 4 }
 0x20c   : > { %1415 = vmatpush1.bf16.msra.mxu1 %v1171_v43 }
 0x20d   : > { %v1014_v29 = vpop.permute.xlu0 %1013  ;;  %v963_v5 = vpop.permute.xlu1 %962  ;;  %v1095_v53 = vsel %vm485_vm3, %v2317_v51, %v1047_v47 }
 0x20e   : > { %v981_v61 = vsel %vm331_vm0, %v961_v38, %v963_v5  ;;  %1848 = vmatmul.mubr.msk.bf16.vlgmr.msra.gmra.mxu0 %vm1136_vm6, %v2380_v46  ;;  %v1031_v44 = vsel %vm383_vm1, %v1012_v39, %v1014_v29 }
 0x20f   : > { %v1048_v48 = vrot.slane %v981_v61, 4  ;;  %1477 = vmatprep.mubr.bf16.mxu0 %v1929_v13  ;;  %v1177_v54 = vsel %vm485_vm3, %v1031_v44, 0 }
 0x211   : > { %v1018_v49 = vpop.permute.xlu0 %1017  ;;  %v1016_v25 = vpop.permute.xlu1 %1015  ;;  %v1099_v50 = vsel %vm485_vm3, %v2324_v30, %v1048_v48 }
 0x212   : > { %v1035_v52 = vsel %vm383_vm1, %v1018_v49, 0  ;;  %v1032_v20 = vsel %vm383_vm1, %v1014_v29, %v1016_v25  ;;  %1416 = vmatprep.subr.bf16.mxu1 %v1099_v50  ;;  %v1033_v55 = vsel %vm383_vm1, %v1016_v25, %v1018_v49 }
 0x213   : > { %1417 = vmatpush1.bf16.msra.mxu1 %v1095_v53  ;;  %1851 = vmatprep.subr.msk.bf16.mxu0 %vm485_vm3, %v1032_v20  ;;  %v1183_v16 = vsel %vm485_vm3, %v1033_v55, 0 }
 0x214   : > { %1458 = vmatpush1.bf16.msra.mxu0 %v1177_v54  ;;  %1853 = vmatprep.subr.msk.bf16.mxu1 %vm485_vm3, %v1035_v52 }
 0x215   : > { %v967_v56 = vpop.permute.xlu0 %966  ;;  %v965_v30 = vpop.permute.xlu1 %964 }
 0x216   : > { %v982_v57 = vsel %vm331_vm0, %v963_v5, %v965_v30  ;;  %v983_v58 = vsel %vm331_vm0, %v965_v30, %v967_v56  ;;  %1850 = vmatmul.mubr.msk.bf16.vlgmr.msra.gmra.mxu1 %vm1136_vm6, %v2380_v46 }
 0x217   : > { %v1049_v51 = vrot.slane %v982_v57, 4  ;;  %v1050_v59 = vrot.slane %v983_v58, 4  ;;  %1501 = vmatpush1.bf16.msra.mxu1 %v1183_v16  ;;  %1520 = vmatprep.mubr.bf16.mxu1 %v1929_v13 }
 0x219   : > { %v969_v62 = vpop.permute.xlu1 %968  ;;  %v1107_v0 = vsel %vm485_vm3, %v2339_v4, %v1050_v59  ;;  %v1103_v3 = vsel %vm485_vm3, %v2331_v60, %v1049_v51 }
 0x21a   : > { %v984_v21 = vsel %vm331_vm0, %v967_v56, %v969_v62  ;;  %v986_v63 = vsel %vm331_vm0, %v969_v62, 0  ;;  %1459 = vmatprep.subr.bf16.mxu0 %v1107_v0 }
 0x21b   : > { %v1051_v1 = vrot.slane %v984_v21, 4  ;;  %v1052_v2 = vrot.slane %v986_v63, 4  ;;  %1460 = vmatpush1.bf16.msra.mxu0 %v1103_v3 }
 0x21d   : > { %v1115_v23 = vsel %vm485_vm3, %v2347_v28, %v1052_v2  ;;  %v1111_v13 = vsel %vm485_vm3, %v2345_v7, %v1051_v1 }
 0x21e   : > { %1852 = vmatmul.mubr.msk.bf16.vlgmr.msra.gmra.mxu0 %vm1136_vm6, %v2380_v46  ;;  %1502 = vmatprep.subr.bf16.mxu1 %v1115_v23 }
 0x21f   : > { %1503 = vmatpush1.bf16.msra.mxu1 %v1111_v13 }
 0x222   : > { %1854 = vmatmul.mubr.msk.bf16.vlgmr.msra.gmra.mxu1 %vm1136_vm6, %v2380_v46  ;;  %v2474_v4 = vpop.permute.xlu0 %1123 }
 0x226   : > { %v2472_v60 = vpop.permute.xlu1 %1128 }
 0x227   : > { %v2480_v7 = vpop.permute.xlu0 %1564 }
 0x22b   : > { %v2476_v6 = vpop.permute.xlu1 %1568 }
 0x22c   : > { %v2490_v34 = vpop.permute.xlu0 %1608 }
 0x230   : > { %v2483_v14 = vpop.permute.xlu1 %1604 }
 0x2ae   : > { %v1221_v8 = vpop.f32.mrf.mxu0 }
 0x2af   : > { %v1222_v28 = vadd.f32 %v1221_v8, %v2474_v4 }
 0x2b0   : > { %v1223_v19 = vpop.f32.mrf.mxu0 }
 0x2b1   : > { %v1531_v10 = vmax.f32 %v1222_v28, 0.0  ;;  %v1224_v11 = vadd.f32 %v1223_v19, %v2474_v4 }
 0x2b2   : > { %v1225_v46 = vpop.f32.mrf.mxu0 }
 0x2b3   : > { %v1532_v15 = vmax.f32 %v1224_v11, 0.0  ;;  %v1571_v26 = vmul.f32 %v2480_v7, %v1531_v10  ;;  %v1226_v12 = vadd.f32 %v1225_v46, %v2472_v60 }
 0x2b4   : > { %v1227_v18 = vpop.f32.mrf.mxu0 }
 0x2b5   : > { %v1572_v24 = vmul.f32 %v2480_v7, %v1532_v15  ;;  %v1611_v27 = vadd.f32 %v2483_v14, %v1571_v26  ;;  %v1547_v31 = vmax.f32 %v1226_v12, 0.0  ;;  %v1228_v32 = vadd.f32 %v1227_v18, %v2472_v60 }
 0x2b6   : > { %v1264_v33 = vpop.f32.mrf.mxu1 }
 0x2b7   : > { %v1612_v35 = vadd.f32 %v2483_v14, %v1572_v24  ;;  %1643 = vst [vmem:[%s2493_s18] sm:$0xff] %v1611_v27  ;;  %v1265_v36 = vadd.f32 %v1264_v33, %v2474_v4  ;;  %v1587_v37 = vmul.f32 %v2476_v6, %v1547_v31  ;;  %v1548_v17 = vmax.f32 %v1228_v32, 0.0 }
 0x2b8   : > { %v1266_v40 = vpop.f32.mrf.mxu1 }
 0x2b9   : > { %1644 = vst [vmem:[%s2493_s18 + $0x8] sm:$0xff] %v1612_v35  ;;  %v1533_v22 = vmax.f32 %v1265_v36, 0.0  ;;  %v1267_v38 = vadd.f32 %v1266_v40, %v2474_v4  ;;  %v1588_v39 = vmul.f32 %v2476_v6, %v1548_v17  ;;  %v1627_v41 = vadd.f32 %v2490_v34, %v1587_v37 }
 0x2ba   : > { %v1268_v9 = vpop.f32.mrf.mxu1 }
 0x2bb   : > { %v1573_v42 = vmul.f32 %v2480_v7, %v1533_v22  ;;  %v1534_v43 = vmax.f32 %v1267_v38, 0.0  ;;  %v1269_v45 = vadd.f32 %v1268_v9, %v2472_v60  ;;  %v1628_v29 = vadd.f32 %v2490_v34, %v1588_v39  ;;  %1659 = vst [vmem:[%s2493_s18 + $0x80] sm:$0xff] %v1627_v41 }
 0x2bc   : > { %v1270_v5 = vpop.f32.mrf.mxu1 }
 0x2bd   : > { %v1613_v47 = vadd.f32 %v2483_v14, %v1573_v42  ;;  %v1574_v61 = vmul.f32 %v2480_v7, %v1534_v43  ;;  %v1549_v48 = vmax.f32 %v1269_v45, 0.0  ;;  %v1271_v44 = vadd.f32 %v1270_v5, %v2472_v60  ;;  %1660 = vst [vmem:[%s2493_s18 + $0x88] sm:$0xff] %v1628_v29 }
 0x2be   : > { %v1307_v49 = vpop.f32.mrf.mxu0 }
 0x2bf   : > { %1645 = vst [vmem:[%s2493_s18 + $0x10] sm:$0xff] %v1613_v47  ;;  %v1614_v25 = vadd.f32 %v2483_v14, %v1574_v61  ;;  %v1308_v50 = vadd.f32 %v1307_v49, %v2474_v4  ;;  %v1589_v52 = vmul.f32 %v2476_v6, %v1549_v48  ;;  %v1550_v20 = vmax.f32 %v1271_v44, 0.0 }
 0x2c0   : > { %v1309_v53 = vpop.f32.mrf.mxu0 }
 0x2c1   : > { %1646 = vst [vmem:[%s2493_s18 + $0x18] sm:$0xff] %v1614_v25  ;;  %v1535_v54 = vmax.f32 %v1308_v50, 0.0  ;;  %v1310_v55 = vadd.f32 %v1309_v53, %v2474_v4  ;;  %v1590_v56 = vmul.f32 %v2476_v6, %v1550_v20  ;;  %v1629_v30 = vadd.f32 %v2490_v34, %v1589_v52 }
 0x2c2   : > { %v1311_v16 = vpop.f32.mrf.mxu0 }
 0x2c3   : > { %v1575_v57 = vmul.f32 %v2480_v7, %v1535_v54  ;;  %v1536_v58 = vmax.f32 %v1310_v55, 0.0  ;;  %v1312_v51 = vadd.f32 %v1311_v16, %v2472_v60  ;;  %v1630_v59 = vadd.f32 %v2490_v34, %v1590_v56  ;;  %1661 = vst [vmem:[%s2493_s18 + $0x90] sm:$0xff] %v1629_v30 }
 0x2c4   : > { %v1313_v62 = vpop.f32.mrf.mxu0 }
 0x2c5   : > { %v1615_v0 = vadd.f32 %v2483_v14, %v1575_v57  ;;  %v1576_v3 = vmul.f32 %v2480_v7, %v1536_v58  ;;  %v1551_v21 = vmax.f32 %v1312_v51, 0.0  ;;  %v1314_v63 = vadd.f32 %v1313_v62, %v2472_v60  ;;  %1662 = vst [vmem:[%s2493_s18 + $0x98] sm:$0xff] %v1630_v59 }
 0x2c6   : > { %v1350_v1 = vpop.f32.mrf.mxu1 }
 0x2c7   : > { %1647 = vst [vmem:[%s2493_s18 + $0x20] sm:$0xff] %v1615_v0  ;;  %v1616_v2 = vadd.f32 %v2483_v14, %v1576_v3  ;;  %v1351_v23 = vadd.f32 %v1350_v1, %v2474_v4  ;;  %v1591_v13 = vmul.f32 %v2476_v6, %v1551_v21  ;;  %v1552_v8 = vmax.f32 %v1314_v63, 0.0 }
 0x2c8   : > { %v1352_v28 = vpop.f32.mrf.mxu1 }
 0x2c9   : > { %1648 = vst [vmem:[%s2493_s18 + $0x28] sm:$0xff] %v1616_v2  ;;  %v1537_v19 = vmax.f32 %v1351_v23, 0.0  ;;  %v1353_v10 = vadd.f32 %v1352_v28, %v2474_v4  ;;  %v1592_v11 = vmul.f32 %v2476_v6, %v1552_v8  ;;  %v1631_v46 = vadd.f32 %v2490_v34, %v1591_v13 }
 0x2ca   : > { %v1354_v15 = vpop.f32.mrf.mxu1 }
 0x2cb   : > { %v1577_v26 = vmul.f32 %v2480_v7, %v1537_v19  ;;  %v1538_v12 = vmax.f32 %v1353_v10, 0.0  ;;  %v1632_v18 = vadd.f32 %v2490_v34, %v1592_v11  ;;  %1663 = vst [vmem:[%s2493_s18 + $0xa0] sm:$0xff] %v1631_v46  ;;  %v1355_v24 = vadd.f32 %v1354_v15, %v2472_v60 }
 0x2cc   : > { %v1356_v27 = vpop.f32.mrf.mxu1 }
 0x2cd   : > { %v1617_v31 = vadd.f32 %v2483_v14, %v1577_v26  ;;  %v1578_v32 = vmul.f32 %v2480_v7, %v1538_v12  ;;  %1664 = vst [vmem:[%s2493_s18 + $0xa8] sm:$0xff] %v1632_v18  ;;  %v1553_v33 = vmax.f32 %v1355_v24, 0.0  ;;  %v1357_v35 = vadd.f32 %v1356_v27, %v2472_v60 }
 0x2ce   : > { %v1393_v36 = vpop.f32.mrf.mxu0 }
 0x2cf   : > { %1649 = vst [vmem:[%s2493_s18 + $0x30] sm:$0xff] %v1617_v31  ;;  %v1618_v37 = vadd.f32 %v2483_v14, %v1578_v32  ;;  %v1394_v17 = vadd.f32 %v1393_v36, %v2474_v4  ;;  %v1593_v40 = vmul.f32 %v2476_v6, %v1553_v33  ;;  %v1554_v22 = vmax.f32 %v1357_v35, 0.0 }
 0x2d0   : > { %v1395_v38 = vpop.f32.mrf.mxu0 }
 0x2d1   : > { %1650 = vst [vmem:[%s2493_s18 + $0x38] sm:$0xff] %v1618_v37  ;;  %v1539_v39 = vmax.f32 %v1394_v17, 0.0  ;;  %v1396_v41 = vadd.f32 %v1395_v38, %v2474_v4  ;;  %v1633_v9 = vadd.f32 %v2490_v34, %v1593_v40  ;;  %v1594_v42 = vmul.f32 %v2476_v6, %v1554_v22 }
 0x2d2   : > { %v1397_v43 = vpop.f32.mrf.mxu0 }
 0x2d3   : > { %v1579_v45 = vmul.f32 %v2480_v7, %v1539_v39  ;;  %v1540_v29 = vmax.f32 %v1396_v41, 0.0  ;;  %1665 = vst [vmem:[%s2493_s18 + $0xb0] sm:$0xff] %v1633_v9  ;;  %v1634_v5 = vadd.f32 %v2490_v34, %v1594_v42  ;;  %v1398_v47 = vadd.f32 %v1397_v43, %v2472_v60 }
 0x2d4   : > { %v1399_v61 = vpop.f32.mrf.mxu0 }
 0x2d5   : > { %v1619_v48 = vadd.f32 %v2483_v14, %v1579_v45  ;;  %v1580_v44 = vmul.f32 %v2480_v7, %v1540_v29  ;;  %1666 = vst [vmem:[%s2493_s18 + $0xb8] sm:$0xff] %v1634_v5  ;;  %v1555_v49 = vmax.f32 %v1398_v47, 0.0  ;;  %v1400_v25 = vadd.f32 %v1399_v61, %v2472_v60 }
 0x2d6   : > { %v1436_v50 = vpop.f32.mrf.mxu1 }
 0x2d7   : > { %1651 = vst [vmem:[%s2493_s18 + $0x40] sm:$0xff] %v1619_v48  ;;  %v1620_v52 = vadd.f32 %v2483_v14, %v1580_v44  ;;  %v1437_v20 = vadd.f32 %v1436_v50, %v2474_v4  ;;  %v1595_v53 = vmul.f32 %v2476_v6, %v1555_v49  ;;  %v1556_v54 = vmax.f32 %v1400_v25, 0.0 }
 0x2d8   : > { %v1438_v55 = vpop.f32.mrf.mxu1 }
 0x2d9   : > { %1652 = vst [vmem:[%s2493_s18 + $0x48] sm:$0xff] %v1620_v52  ;;  %v1541_v56 = vmax.f32 %v1437_v20, 0.0  ;;  %v1439_v30 = vadd.f32 %v1438_v55, %v2474_v4  ;;  %v1635_v16 = vadd.f32 %v2490_v34, %v1595_v53  ;;  %v1596_v57 = vmul.f32 %v2476_v6, %v1556_v54 }
 0x2da   : > { %v1440_v58 = vpop.f32.mrf.mxu1 }
 0x2db   : > { %v1581_v51 = vmul.f32 %v2480_v7, %v1541_v56  ;;  %v1542_v59 = vmax.f32 %v1439_v30, 0.0  ;;  %1667 = vst [vmem:[%s2493_s18 + $0xc0] sm:$0xff] %v1635_v16  ;;  %v1441_v62 = vadd.f32 %v1440_v58, %v2472_v60  ;;  %v1636_v0 = vadd.f32 %v2490_v34, %v1596_v57  ;;  %v1705_v56 = vld [vmem:[%s2493_s18 + $0x20] sm:$0xff] (%p1987_p4)  ;;  %v1707_v30 = vld [vmem:[%s2493_s18 + $0x28] sm:$0xff] (%p1987_p4)  ;;  %v1709_v16 = vld [vmem:[%s2493_s18 + $0x30] sm:$0xff] (%p1987_p4) }
 0x2dc   : > { %v1442_v3 = vpop.f32.mrf.mxu1  ;;  %1706 = vst [vmem:[%s2624_s30 + $0x20] sm:$0xff] (%p1987_p4), %v1705_v56  ;;  %1708 = vst [vmem:[%s2624_s30 + $0x28] sm:$0xff] (%p1987_p4), %v1707_v30  ;;  %v1711_v57 = vld [vmem:[%s2493_s18 + $0x38] sm:$0xff] (%p1987_p4) }
 0x2dd   : > { %v1621_v21 = vadd.f32 %v2483_v14, %v1581_v51  ;;  %v1582_v63 = vmul.f32 %v2480_v7, %v1542_v59  ;;  %v1557_v1 = vmax.f32 %v1441_v62, 0.0  ;;  %1668 = vst [vmem:[%s2493_s18 + $0xc8] sm:$0xff] %v1636_v0  ;;  %v1443_v2 = vadd.f32 %v1442_v3, %v2472_v60  ;;  %1710 = vst [vmem:[%s2624_s30 + $0x30] sm:$0xff] (%p1987_p4), %v1709_v16 }
 0x2de   : > { %v1479_v23 = vpop.f32.mrf.mxu0  ;;  %v1713_v58 = vld [vmem:[%s2493_s18 + $0x40] sm:$0xff] (%p1987_p4)  ;;  %1712 = vst [vmem:[%s2624_s30 + $0x38] sm:$0xff] (%p1987_p4), %v1711_v57 }
 0x2df   : > { %1653 = vst [vmem:[%s2493_s18 + $0x50] sm:$0xff] %v1621_v21  ;;  %v1622_v13 = vadd.f32 %v2483_v14, %v1582_v63  ;;  %v1597_v8 = vmul.f32 %v2476_v6, %v1557_v1  ;;  %v1558_v28 = vmax.f32 %v1443_v2, 0.0  ;;  %v1480_v19 = vadd.f32 %v1479_v23, %v2474_v4  ;;  %1714 = vst [vmem:[%s2624_s30 + $0x40] sm:$0xff] (%p1987_p4), %v1713_v58  ;;  %v1729_v1 = vld [vmem:[%s2493_s18 + $0x80] sm:$0xff] (%p1987_p4)  ;;  %v1731_v2 = vld [vmem:[%s2493_s18 + $0x88] sm:$0xff] (%p1987_p4) }
 0x2e0   : > { %v1481_v10 = vpop.f32.mrf.mxu0  ;;  %v1715_v51 = vld [vmem:[%s2493_s18 + $0x48] sm:$0xff] (%p1987_p4)  ;;  %1730 = vst [vmem:[%s2624_s30 + $0x100] sm:$0xff] (%p1987_p4), %v1729_v1  ;;  %1732 = vst [vmem:[%s2624_s30 + $0x108] sm:$0xff] (%p1987_p4), %v1731_v2  ;;  %v1733_v23 = vld [vmem:[%s2493_s18 + $0x90] sm:$0xff] (%p1987_p4) }
 0x2e1   : > { %1654 = vst [vmem:[%s2493_s18 + $0x58] sm:$0xff] %v1622_v13  ;;  %v1637_v11 = vadd.f32 %v2490_v34, %v1597_v8  ;;  %v1598_v46 = vmul.f32 %v2476_v6, %v1558_v28  ;;  %v1543_v15 = vmax.f32 %v1480_v19, 0.0  ;;  %v1482_v26 = vadd.f32 %v1481_v10, %v2474_v4  ;;  %1716 = vst [vmem:[%s2624_s30 + $0x48] sm:$0xff] (%p1987_p4), %v1715_v51  ;;  %v1735_v13 = vld [vmem:[%s2493_s18 + $0x98] sm:$0xff] (%p1987_p4)  ;;  %v1737_v8 = vld [vmem:[%s2493_s18 + $0xa0] sm:$0xff] (%p1987_p4) }
 0x2e2   : > { %v1483_v12 = vpop.f32.mrf.mxu0  ;;  %v1522_v18 = vpop.f32.mrf.mxu1  ;;  %1734 = vst [vmem:[%s2624_s30 + $0x110] sm:$0xff] (%p1987_p4), %v1733_v23  ;;  %1736 = vst [vmem:[%s2624_s30 + $0x118] sm:$0xff] (%p1987_p4), %v1735_v13  ;;  %v1739_v28 = vld [vmem:[%s2493_s18 + $0xa8] sm:$0xff] (%p1987_p4)  ;;  %v1741_v19 = vld [vmem:[%s2493_s18 + $0xb0] sm:$0xff] (%p1987_p4) }
 0x2e3   : > { %1669 = vst [vmem:[%s2493_s18 + $0xd0] sm:$0xff] %v1637_v11  ;;  %v1638_v24 = vadd.f32 %v2490_v34, %v1598_v46  ;;  %v1583_v27 = vmul.f32 %v2480_v7, %v1543_v15  ;;  %v1544_v31 = vmax.f32 %v1482_v26, 0.0  ;;  %v1484_v32 = vadd.f32 %v1483_v12, %v2472_v60  ;;  %1738 = vst [vmem:[%s2624_s30 + $0x120] sm:$0xff] (%p1987_p4), %v1737_v8  ;;  %v1743_v10 = vld [vmem:[%s2493_s18 + $0xb8] sm:$0xff] (%p1987_p4)  ;;  %v1745_v11 = vld [vmem:[%s2493_s18 + $0xc0] sm:$0xff] (%p1987_p4) }
 0x2e4   : > { %v1523_v33 = vadd.f32 %v1522_v18, %v2474_v4  ;;  %v1485_v35 = vpop.f32.mrf.mxu0  ;;  %v1524_v36 = vpop.f32.mrf.mxu1  ;;  %1740 = vst [vmem:[%s2624_s30 + $0x128] sm:$0xff] (%p1987_p4), %v1739_v28  ;;  %1742 = vst [vmem:[%s2624_s30 + $0x130] sm:$0xff] (%p1987_p4), %v1741_v19  ;;  %v1747_v46 = vld [vmem:[%s2493_s18 + $0xc8] sm:$0xff] (%p1987_p4) }
 0x2e5   : > { %1670 = vst [vmem:[%s2493_s18 + $0xd8] sm:$0xff] %v1638_v24  ;;  %v1623_v37 = vadd.f32 %v2483_v14, %v1583_v27  ;;  %v1584_v17 = vmul.f32 %v2480_v7, %v1544_v31  ;;  %v1559_v40 = vmax.f32 %v1484_v32, 0.0  ;;  %v1486_v22 = vadd.f32 %v1485_v35, %v2472_v60  ;;  %1744 = vst [vmem:[%s2624_s30 + $0x138] sm:$0xff] (%p1987_p4), %v1743_v10 }
 0x2e6   : > { %v1545_v38 = vmax.f32 %v1523_v33, 0.0  ;;  %v1525_v39 = vadd.f32 %v1524_v36, %v2474_v4  ;;  %v1526_v41 = vpop.f32.mrf.mxu1  ;;  %v1717_v59 = vld [vmem:[%s2493_s18 + $0x50] sm:$0xff] (%p1987_p4)  ;;  %1746 = vst [vmem:[%s2624_s30 + $0x140] sm:$0xff] (%p1987_p4), %v1745_v11  ;;  %1748 = vst [vmem:[%s2624_s30 + $0x148] sm:$0xff] (%p1987_p4), %v1747_v46 }
 0x2e7   : > { %1655 = vst [vmem:[%s2493_s18 + $0x60] sm:$0xff] %v1623_v37  ;;  %v1624_v9 = vadd.f32 %v2483_v14, %v1584_v17  ;;  %v1599_v42 = vmul.f32 %v2476_v6, %v1559_v40  ;;  %v1560_v43 = vmax.f32 %v1486_v22, 0.0  ;;  %v1527_v45 = vadd.f32 %v1526_v41, %v2472_v60  ;;  %1718 = vst [vmem:[%s2624_s30 + $0x50] sm:$0xff] (%p1987_p4), %v1717_v59 }
 0x2e8   : > { %v1585_v29 = vmul.f32 %v2480_v7, %v1545_v38  ;;  %v1546_v5 = vmax.f32 %v1525_v39, 0.0  ;;  %v1528_v47 = vpop.f32.mrf.mxu1  ;;  %v1719_v62 = vld [vmem:[%s2493_s18 + $0x58] sm:$0xff] (%p1987_p4) }
 0x2e9   : > { %1656 = vst [vmem:[%s2493_s18 + $0x68] sm:$0xff] %v1624_v9  ;;  %v1639_v4 = vadd.f32 %v2490_v34, %v1599_v42  ;;  %v1600_v61 = vmul.f32 %v2476_v6, %v1560_v43  ;;  %v1561_v48 = vmax.f32 %v1527_v45, 0.0  ;;  %v1529_v44 = vadd.f32 %v1528_v47, %v2472_v60  ;;  %1720 = vst [vmem:[%s2624_s30 + $0x58] sm:$0xff] (%p1987_p4), %v1719_v62 }
 0x2ea   : > { %v1625_v49 = vadd.f32 %v2483_v14, %v1585_v29  ;;  %v1586_v25 = vmul.f32 %v2480_v7, %v1546_v5  ;;  %v1699_v7 = vld [vmem:[%s2493_s18 + $0x8] sm:$0xff] (%p1987_p4)  ;;  %v1749_v15 = vld [vmem:[%s2493_s18 + $0xd0] sm:$0xff] (%p1987_p4) }
 0x2eb   : > { %1671 = vst [vmem:[%s2493_s18 + $0xe0] sm:$0xff] %v1639_v4  ;;  %v1640_v50 = vadd.f32 %v2490_v34, %v1600_v61  ;;  %v1601_v52 = vmul.f32 %v2476_v6, %v1561_v48  ;;  %v1562_v20 = vmax.f32 %v1529_v44, 0.0  ;;  %1700 = vst [vmem:[%s2624_s30 + $0x8] sm:$0xff] (%p1987_p4), %v1699_v7 }
 0x2ec   : > { %1657 = vst [vmem:[%s2493_s18 + $0x70] sm:$0xff] %v1625_v49  ;;  %v1626_v53 = vadd.f32 %v2483_v14, %v1586_v25  ;;  %v1701_v14 = vld [vmem:[%s2493_s18 + $0x10] sm:$0xff] (%p1987_p4)  ;;  %1750 = vst [vmem:[%s2624_s30 + $0x150] sm:$0xff] (%p1987_p4), %v1749_v15  ;;  %v1751_v26 = vld [vmem:[%s2493_s18 + $0xd8] sm:$0xff] (%p1987_p4) }
 0x2ed   : > { %1672 = vst [vmem:[%s2493_s18 + $0xe8] sm:$0xff] %v1640_v50  ;;  %v1641_v54 = vadd.f32 %v2490_v34, %v1601_v52  ;;  %v1602_v55 = vmul.f32 %v2476_v6, %v1562_v20  ;;  %1681 = sbr.rel (!%p1987_p4) target bundleno = 762 (0x2fa), region = 44  ;;  %v1697_v6 = vld [vmem:[%s2493_s18] sm:$0xff] (%p1987_p4)  ;;  %1702 = vst [vmem:[%s2624_s30 + $0x10] sm:$0xff] (%p1987_p4), %v1701_v14 }
 0x2ee   : > { %1658 = vst [vmem:[%s2493_s18 + $0x78] sm:$0xff] %v1626_v53  ;;  %1698 = vst [vmem:[%s2624_s30] sm:$0xff] (%p1987_p4), %v1697_v6  ;;  %v1721_v0 = vld [vmem:[%s2493_s18 + $0x60] sm:$0xff] (%p1987_p4) }
 0x2ef   : > { %1673 = vst [vmem:[%s2493_s18 + $0xf0] sm:$0xff] %v1641_v54  ;;  %v1642_v60 = vadd.f32 %v2490_v34, %v1602_v55  ;;  %v1703_v34 = vld [vmem:[%s2493_s18 + $0x18] sm:$0xff] (%p1987_p4)  ;;  %1722 = vst [vmem:[%s2624_s30 + $0x60] sm:$0xff] (%p1987_p4), %v1721_v0 }
 0x2f0   : > { %1704 = vst [vmem:[%s2624_s30 + $0x18] sm:$0xff] (%p1987_p4), %v1703_v34  ;;  %v1723_v3 = vld [vmem:[%s2493_s18 + $0x68] sm:$0xff] (%p1987_p4)  ;;  %1752 = vst [vmem:[%s2624_s30 + $0x158] sm:$0xff] (%p1987_p4), %v1751_v26 }
 0x2f1   : > { %1674 = vst [vmem:[%s2493_s18 + $0xf8] sm:$0xff] %v1642_v60  ;;  %1724 = vst [vmem:[%s2624_s30 + $0x68] sm:$0xff] (%p1987_p4), %v1723_v3 }
 0x2f2   : > { %v1753_v12 = vld [vmem:[%s2493_s18 + $0xe0] sm:$0xff] }
 0x2f3   : > { %v1725_v21 = vld [vmem:[%s2493_s18 + $0x70] sm:$0xff]  ;;  %1754 = vst [vmem:[%s2624_s30 + $0x160] sm:$0xff] %v1753_v12 }
 0x2f4   : > { %1726 = vst [vmem:[%s2624_s30 + $0x70] sm:$0xff] %v1725_v21  ;;  %v1755_v18 = vld [vmem:[%s2493_s18 + $0xe8] sm:$0xff] }
 0x2f5   : > { %v1727_v63 = vld [vmem:[%s2493_s18 + $0x78] sm:$0xff]  ;;  %1756 = vst [vmem:[%s2624_s30 + $0x168] sm:$0xff] %v1755_v18 }
 0x2f6   : > { %1728 = vst [vmem:[%s2624_s30 + $0x78] sm:$0xff] %v1727_v63  ;;  %v1757_v24 = vld [vmem:[%s2493_s18 + $0xf0] sm:$0xff] }
 0x2f7   : > { %1758 = vst [vmem:[%s2624_s30 + $0x170] sm:$0xff] %v1757_v24 }
 0x2f8   : > { %v1759_v27 = vld [vmem:[%s2493_s18 + $0xf8] sm:$0xff] }
 0x2f9   : > { %1760 = vst [vmem:[%s2624_s30 + $0x178] sm:$0xff] %v1759_v27 }
 0x2fa PF: > { %p12_p8 = scmp.ge.s32.totalorder %s1977_s22, 4   ;;  %s2704_s18 = smov %s1920_s19 }
 0x2fb   : > { %s2705_s19 = smov %s1985_s25  ;;  %s2706_s20 = smov %s1977_s22 }
 0x2fc   :  { %14 = sbr.rel (!%p12_p8) target bundleno = 2 (0x2), region = 93 }

</bundles_post_ra>
